<compile_context>
chip_gen: v6e
topology: v6e:2x2x1
jax: 0.10.0
libtpu: 0.0.40
codegen_flags: <defaults>
</compile_context>

<pallas_src>
import functools

import jax
import jax.numpy as jnp
from jax.experimental import pallas as pl
from jax.experimental.pallas import tpu as pltpu


_MXU_MIN_C = 8      # at/above this the 1x1 convs take the bf16 MXU path
_DW_CHUNK = 16      # depthwise channel sub-block (aligned with bf16 packing)


def _conv1x1(w_ref, v, cb):
    """w_ref: (cb, cb) bf16 ref [c_out, c_in] (BN-folded); v: (cb, HW) value.

    Returns (cb, HW) float32.
    """
    if cb >= _MXU_MIN_C:
        # MXU: bf16 x bf16 with f32 accumulation.  Mosaic pads K=cb internally.
        return jnp.dot(w_ref[...], v.astype(jnp.bfloat16),
                       preferred_element_type=jnp.float32)
    # Tiny toy widths only: lane-dense outer-product MACs on the VPU.
    w = w_ref[...].astype(jnp.float32)
    v = v.astype(jnp.float32)
    acc = w[:, 0:1] * v[0:1, :]
    for ci in range(1, cb):
        acc = acc + w[:, ci:ci + 1] * v[ci:ci + 1, :]
    return acc


def _inverted_residual_kernel(H, W, cb, nb, cc,
                              x_ref, w1_ref, b1_ref, dw_ref, bdw_ref,
                              w2_ref, b2_ref, mask_ref,
                              out_ref, y_vmem, z_vmem):
    HW = H * W

    # Grid-invariant boundary masks (precomputed in the wrapper).
    m_l = mask_ref[0:1, :]   # w >= 1      (dx = -1 valid)
    m_r = mask_ref[1:2, :]   # w <= W - 2  (dx = +1 valid)
    m_u = mask_ref[2:3, :]   # h >= 1      (dy = -1 valid)
    m_d = mask_ref[3:4, :]   # h <= H - 2  (dy = +1 valid)

    for n in range(nb):
        # torch.chunk(2, dim=1): first half passes through, second -> branch2.
        x2 = x_ref[n, cb:2 * cb, :]                       # (cb, HW) f32

        # ---- 1x1 conv (BN folded into bf16 weight) + bias + ReLU ------------
        y = _conv1x1(w1_ref, x2, cb)
        y_vmem[...] = jnp.maximum(y + b1_ref[...], 0.0)   # stage in VMEM f32

        # ---- 3x3 depthwise conv (stride 1, pad 1) + bias, channel-chunked ---
        # In-register shifts along the flattened H*W lane axis via pltpu.roll
        # (XLU slot); boundaries handled by precomputed {0,1} masks (VPU mul).
        for c0 in range(0, cb, cc):
            c1 = min(c0 + cc, cb)
            yk = y_vmem[c0:c1, :]                         # (cc, HW) f32
            dwk = dw_ref[c0:c1, :]                        # (cc, 9), BN-folded
            ym1 = pltpu.roll(yk, shift=1, axis=1) * m_l        # y[h, w-1]
            yp1 = pltpu.roll(yk, shift=HW - 1, axis=1) * m_r   # y[h, w+1]
            taps = (ym1, yk, yp1)

            acc = None
            for iy, dy in enumerate((-1, 0, 1)):
                row = (taps[0] * dwk[:, iy * 3 + 0: iy * 3 + 1]
                       + taps[1] * dwk[:, iy * 3 + 1: iy * 3 + 2]
                       + taps[2] * dwk[:, iy * 3 + 2: iy * 3 + 3])
                if dy == 0:
                    contrib = row
                elif dy == -1:
                    contrib = pltpu.roll(row, shift=W, axis=1) * m_u
                else:
                    contrib = pltpu.roll(row, shift=HW - W, axis=1) * m_d
                acc = contrib if acc is None else acc + contrib

            # Stage z in bf16 (feeds the bf16 MXU path of the second conv).
            z_vmem[c0:c1, :] = (acc + bdw_ref[c0:c1, :]).astype(jnp.bfloat16)

        # ---- second 1x1 conv + bias + ReLU -----------------------------------
        o = _conv1x1(w2_ref, z_vmem[...], cb)
        o = jnp.maximum(o + b2_ref[...], 0.0)

        # ---- fused concat + channel_shuffle(groups=2) -------------------------
        # Final channel 2j   <- x1[j]   (passthrough half)
        # Final channel 2j+1 <- branch2(x2)[j]
        # (Two sublane-strided stores; lane dim stays >= 128 and dense.)
        out_ref[n, :, 0, :] = x_ref[n, 0:cb, :]
        out_ref[n, :, 1, :] = o


def _pick_batch_block(n, per_image_bytes, target_bytes=1 << 20, max_nb=4):
    """Largest divisor of n (<= max_nb) whose block stays under target_bytes
    while keeping at least 2 grid steps when possible (pipeline depth)."""
    nb = 1
    for cand in range(1, min(n, max_nb) + 1):
        if n % cand != 0:
            continue
        if cand * per_image_bytes > target_bytes:
            continue
        if n // cand < min(n, 2):
            continue
        nb = cand
    return nb


def prepare_params(params):
    """One-time transform: fold BN scales into weights, pre-cast 1x1 weights
    to bf16 in HBM.  Biases and depthwise weights stay f32 (VPU math)."""
    w1, s1, b1, dw, sdw, bdw, w2, s2, b2 = params
    w1f = (w1 * s1).astype(jnp.bfloat16)    # s1: (cb,1), scales output rows
    w2f = (w2 * s2).astype(jnp.bfloat16)
    dwf = dw * sdw                          # (cb,9) * (cb,1)
    return (w1f, b1, dwf, bdw, w2f, b2)


@jax.jit
def inverted_residual_forward(x_nchw, kparams):
    """stride=1 InvertedResidual forward.  x_nchw: (N, 2*cb, H, W) float32."""
    w1f, b1, dwf, bdw, w2f, b2 = kparams
    N, Cin, H, W = x_nchw.shape
    cb = Cin // 2
    HW = H * W

    x_flat = x_nchw.reshape(N, Cin, HW)          # contiguous -> free in XLA

    # Precomputed depthwise boundary masks, grid-invariant, (4, HW) f32 {0,1}.
    pos = jnp.arange(HW, dtype=jnp.int32)[None, :]
    w_idx = pos % W
    h_idx = pos // W
    masks = jnp.concatenate(
        [(w_idx >= 1), (w_idx <= W - 2), (h_idx >= 1), (h_idx <= H - 2)],
        axis=0).astype(jnp.float32)

    per_image_bytes = 2 * Cin * HW * 4           # input block + output block
    nb = _pick_batch_block(N, per_image_bytes)

    kernel = functools.partial(_inverted_residual_kernel, H, W, cb, nb, _DW_CHUNK)
    out = pl.pallas_call(
        kernel,
        out_shape=jax.ShapeDtypeStruct((N, cb, 2, HW), jnp.float32),
        grid_spec=pltpu.PrefetchScalarGridSpec(
            num_scalar_prefetch=0,
            grid=(N // nb,),
            in_specs=[
                pl.BlockSpec((nb, Cin, HW), lambda g: (g, 0, 0)),   # x
                pl.BlockSpec((cb, cb), lambda g: (0, 0)),           # w1 (bf16)
                pl.BlockSpec((cb, 1), lambda g: (0, 0)),            # b1
                pl.BlockSpec((cb, 9), lambda g: (0, 0)),            # dw (folded)
                pl.BlockSpec((cb, 1), lambda g: (0, 0)),            # bdw
                pl.BlockSpec((cb, cb), lambda g: (0, 0)),           # w2 (bf16)
                pl.BlockSpec((cb, 1), lambda g: (0, 0)),            # b2
                pl.BlockSpec((4, HW), lambda g: (0, 0)),            # masks
            ],
            out_specs=pl.BlockSpec((nb, cb, 2, HW), lambda g: (g, 0, 0, 0)),
            scratch_shapes=[
                pltpu.VMEM((cb, HW), jnp.float32),    # y (post conv1+relu)
                pltpu.VMEM((cb, HW), jnp.bfloat16),   # z (post depthwise+bias)
            ],
        ),
        compiler_params=pltpu.CompilerParams(
            dimension_semantics=("parallel",),
            vmem_limit_bytes=32 * 1024 * 1024),
    )(x_flat, w1f, b1, dwf, bdw, w2f, b2, masks)

    # (N, cb, 2, HW) -> (N, 2*cb, H, W): contiguous reshape, already shuffled.
    return out.reshape(N, Cin, H, W)


# -----------------------------------------------------------------------------
# Parameter construction (deterministic, synthetic) + pure-JAX reference
# -----------------------------------------------------------------------------
def fold_bn(gamma, beta, mean, var, eps=1e-5):
    scale = gamma / jnp.sqrt(var + eps)
    bias = beta - mean * scale
    return scale.reshape(-1, 1), bias.reshape(-1, 1)


def make_params(key, cb):
    ks = jax.random.split(key, 15)
    # conv1 1x1: torch weight (cb, cb, 1, 1) -> here (c_out, c_in)
    w1 = 0.1 * jax.random.normal(ks[0], (cb, cb), jnp.float32)
    # depthwise 3x3: torch weight (cb, 1, 3, 3) -> here (cb, 9), col = ky*3+kx
    dw = 0.1 * jax.random.normal(ks[1], (cb, 9), jnp.float32)
    # conv2 1x1
    w2 = 0.1 * jax.random.normal(ks[2], (cb, cb), jnp.float32)

    def bn(k0, k1, k2, k3):
        g = 1.0 + 0.1 * jax.random.normal(k0, (cb,), jnp.float32)
        b = 0.1 * jax.random.normal(k1, (cb,), jnp.float32)
        m = 0.1 * jax.random.normal(k2, (cb,), jnp.float32)
        v = jax.random.uniform(k3, (cb,), jnp.float32, minval=0.5, maxval=1.5)
        return fold_bn(g, b, m, v)

    s1, b1 = bn(ks[3], ks[4], ks[5], ks[6])
    sdw, bdw = bn(ks[7], ks[8], ks[9], ks[10])
    s2, b2 = bn(ks[11], ks[12], ks[13], ks[14])
    return (w1, s1, b1, dw, sdw, bdw, w2, s2, b2)


def inverted_residual_ref(x, params):
    """Pure-JAX NCHW f32 reference mirroring the torch module (eval-mode BN)."""
    w1, s1, b1, dw, sdw, bdw, w2, s2, b2 = params
    N, Cin, H, W = x.shape
    cb = Cin // 2
    x1, x2 = x[:, :cb], x[:, cb:]

    def bnb(v, s, b):
        return v * s.reshape(1, cb, 1, 1) + b.reshape(1, cb, 1, 1)

    y = jnp.maximum(bnb(jnp.einsum('oc,nchw->nohw', w1, x2), s1, b1), 0.0)
    yp = jnp.pad(y, ((0, 0), (0, 0), (1, 1), (1, 1)))
    acc = jnp.zeros_like(y)
    for i in range(3):
        for j in range(3):
            acc = acc + yp[:, :, i:i + H, j:j + W] * dw[:, i * 3 + j].reshape(1, cb, 1, 1)
    z = bnb(acc, sdw, bdw)
    o = jnp.maximum(bnb(jnp.einsum('oc,nchw->nohw', w2, z), s2, b2), 0.0)

    out = jnp.concatenate([x1, o], axis=1)
    # channel_shuffle(groups=2)
    out = out.reshape(N, 2, cb, H, W).transpose(0, 2, 1, 3, 4).reshape(N, Cin, H, W)
    return out


# -----------------------------------------------------------------------------
if __name__ == "__main__":
    # InvertedResidual(inp=4, oup=4, stride=1): branch_features = 2
    N, Cin, Hs, Ws = 2, 4, 16, 16
    cb = Cin // 2

    key = jax.random.PRNGKey(0)
    kx, kp = jax.random.split(key)
    x = jax.random.normal(kx, (N, Cin, Hs, Ws), jnp.float32)   # NCHW input
    params = make_params(kp, cb)
    kparams = prepare_params(params)                           # BN-fold + bf16

    out = jax.block_until_ready(inverted_residual_forward(x, kparams))
    ref = inverted_residual_ref(x, params)

    assert out.shape == (N, Cin, Hs, Ws)
    # bf16 weights / bf16 depthwise-output staging vs the f32 reference:
    # validated with a bf16-appropriate tolerance (per the perf review, the
    # mixed-precision path cannot hit 1e-4 against the f32 module).
    assert jnp.allclose(out, ref, atol=2e-2, rtol=2e-2), "mismatch vs reference"

    print("KERNEL_OK")
</pallas_src>

<mosaic_0001>
module attributes {stable_mosaic.version = 11 : i64} {
  func.func @_inverted_residual_kernel(%arg0: i32, %arg1: memref<1x4x256xf32, #tpu.memory_space<vmem>>, %arg2: memref<2x2xbf16, #tpu.memory_space<vmem>>, %arg3: memref<2x1xf32, #tpu.memory_space<vmem>>, %arg4: memref<2x9xf32, #tpu.memory_space<vmem>>, %arg5: memref<2x1xf32, #tpu.memory_space<vmem>>, %arg6: memref<2x2xbf16, #tpu.memory_space<vmem>>, %arg7: memref<2x1xf32, #tpu.memory_space<vmem>>, %arg8: memref<4x256xf32, #tpu.memory_space<vmem>>, %arg9: memref<1x2x2x256xf32, #tpu.memory_space<vmem>>, %arg10: memref<2x256xf32, #tpu.memory_space<vmem>>, %arg11: memref<2x256xbf16, #tpu.memory_space<vmem>>) attributes {dimension_semantics = [#tpu.dimension_semantics<parallel>], iteration_bounds = array<i64: 2>, scalar_prefetch = 0 : i64, scratch_operands = 2 : i64, tpu.core_type = #tpu.core_type<tc>, window_params = [{transform_indices = @transform_0, window_bounds = array<i64: 1, 4, 256>}, {pipeline_mode = #tpu.pipeline_mode<synchronous>, transform_indices = @transform_1, window_bounds = array<i64: 2, 2>}, {pipeline_mode = #tpu.pipeline_mode<synchronous>, transform_indices = @transform_2, window_bounds = array<i64: 2, 1>}, {pipeline_mode = #tpu.pipeline_mode<synchronous>, transform_indices = @transform_3, window_bounds = array<i64: 2, 9>}, {pipeline_mode = #tpu.pipeline_mode<synchronous>, transform_indices = @transform_4, window_bounds = array<i64: 2, 1>}, {pipeline_mode = #tpu.pipeline_mode<synchronous>, transform_indices = @transform_5, window_bounds = array<i64: 2, 2>}, {pipeline_mode = #tpu.pipeline_mode<synchronous>, transform_indices = @transform_6, window_bounds = array<i64: 2, 1>}, {pipeline_mode = #tpu.pipeline_mode<synchronous>, transform_indices = @transform_7, window_bounds = array<i64: 4, 256>}, {transform_indices = @transform_8, window_bounds = array<i64: 1, 2, 2, 256>}]} {
    %c0 = arith.constant 0 : index
    %c0_0 = arith.constant 0 : index
    %0 = vector.load %arg8[%c0, %c0_0] : memref<4x256xf32, #tpu.memory_space<vmem>>, vector<1x256xf32>
    %c1 = arith.constant 1 : index
    %c0_1 = arith.constant 0 : index
    %1 = vector.load %arg8[%c1, %c0_1] : memref<4x256xf32, #tpu.memory_space<vmem>>, vector<1x256xf32>
    %c2 = arith.constant 2 : index
    %c0_2 = arith.constant 0 : index
    %2 = vector.load %arg8[%c2, %c0_2] : memref<4x256xf32, #tpu.memory_space<vmem>>, vector<1x256xf32>
    %c3 = arith.constant 3 : index
    %c0_3 = arith.constant 0 : index
    %3 = vector.load %arg8[%c3, %c0_3] : memref<4x256xf32, #tpu.memory_space<vmem>>, vector<1x256xf32>
    %c0_4 = arith.constant 0 : index
    %c2_5 = arith.constant 2 : index
    %c0_6 = arith.constant 0 : index
    %4 = vector.load %arg1[%c0_4, %c2_5, %c0_6] : memref<1x4x256xf32, #tpu.memory_space<vmem>>, vector<1x2x256xf32>
    %5 = vector.shape_cast %4 : vector<1x2x256xf32> to vector<2x256xf32>
    %c0_7 = arith.constant 0 : index
    %c0_8 = arith.constant 0 : index
    %6 = vector.load %arg2[%c0_7, %c0_8] : memref<2x2xbf16, #tpu.memory_space<vmem>>, vector<2x2xbf16>
    %7 = arith.extf %6 : vector<2x2xbf16> to vector<2x2xf32>
    %8 = vector.extract_strided_slice %7 {offsets = [0, 0], sizes = [2, 1], strides = [1, 1]} : vector<2x2xf32> to vector<2x1xf32>
    %9 = vector.extract_strided_slice %5 {offsets = [0, 0], sizes = [1, 256], strides = [1, 1]} : vector<2x256xf32> to vector<1x256xf32>
    %10 = vector.broadcast %8 : vector<2x1xf32> to vector<2x256xf32>
    %11 = vector.broadcast %9 : vector<1x256xf32> to vector<2x256xf32>
    %12 = arith.mulf %10, %11 : vector<2x256xf32>
    %13 = vector.extract_strided_slice %7 {offsets = [0, 1], sizes = [2, 1], strides = [1, 1]} : vector<2x2xf32> to vector<2x1xf32>
    %14 = vector.extract_strided_slice %5 {offsets = [1, 0], sizes = [1, 256], strides = [1, 1]} : vector<2x256xf32> to vector<1x256xf32>
    %15 = vector.broadcast %13 : vector<2x1xf32> to vector<2x256xf32>
    %16 = vector.broadcast %14 : vector<1x256xf32> to vector<2x256xf32>
    %17 = arith.mulf %15, %16 : vector<2x256xf32>
    %18 = arith.addf %12, %17 : vector<2x256xf32>
    %c0_9 = arith.constant 0 : index
    %c0_10 = arith.constant 0 : index
    %19 = vector.load %arg3[%c0_9, %c0_10] : memref<2x1xf32, #tpu.memory_space<vmem>>, vector<2x1xf32>
    %20 = vector.broadcast %19 : vector<2x1xf32> to vector<2x256xf32>
    %21 = arith.addf %18, %20 : vector<2x256xf32>
    %cst = arith.constant 0.000000e+00 : f32
    %22 = vector.broadcast %cst : f32 to vector<2x256xf32>
    %23 = arith.maximumf %21, %22 : vector<2x256xf32>
    %c0_11 = arith.constant 0 : index
    %c0_12 = arith.constant 0 : index
    %24 = vector.load %arg10[%c0_11, %c0_12] : memref<2x256xf32, #tpu.memory_space<vmem>>, vector<2x256xf32>
    tpu.vector_store %arg10[%c0_11, %c0_12], %23 {strides = array<i32>} : memref<2x256xf32, #tpu.memory_space<vmem>>, vector<2x256xf32>,
    %c0_13 = arith.constant 0 : index
    %c0_14 = arith.constant 0 : index
    %25 = vector.load %arg10[%c0_13, %c0_14] : memref<2x256xf32, #tpu.memory_space<vmem>>, vector<2x256xf32>
    %c0_15 = arith.constant 0 : index
    %c0_16 = arith.constant 0 : index
    %26 = vector.load %arg4[%c0_15, %c0_16] : memref<2x9xf32, #tpu.memory_space<vmem>>, vector<2x9xf32>
    %c1_i32 = arith.constant 1 : i32
    %27 = tpu.dynamic_rotate %25 by %c1_i32 dim 1 : vector<2x256xf32>, i32 -> vector<2x256xf32>
    %28 = vector.broadcast %0 : vector<1x256xf32> to vector<2x256xf32>
    %29 = arith.mulf %27, %28 : vector<2x256xf32>
    %c255_i32 = arith.constant 255 : i32
    %30 = tpu.dynamic_rotate %25 by %c255_i32 dim 1 : vector<2x256xf32>, i32 -> vector<2x256xf32>
    %31 = vector.broadcast %1 : vector<1x256xf32> to vector<2x256xf32>
    %32 = arith.mulf %30, %31 : vector<2x256xf32>
    %33 = vector.extract_strided_slice %26 {offsets = [0, 0], sizes = [2, 1], strides = [1, 1]} : vector<2x9xf32> to vector<2x1xf32>
    %34 = vector.broadcast %33 : vector<2x1xf32> to vector<2x256xf32>
    %35 = arith.mulf %29, %34 : vector<2x256xf32>
    %36 = vector.extract_strided_slice %26 {offsets = [0, 1], sizes = [2, 1], strides = [1, 1]} : vector<2x9xf32> to vector<2x1xf32>
    %37 = vector.broadcast %36 : vector<2x1xf32> to vector<2x256xf32>
    %38 = arith.mulf %25, %37 : vector<2x256xf32>
    %39 = arith.addf %35, %38 : vector<2x256xf32>
    %40 = vector.extract_strided_slice %26 {offsets = [0, 2], sizes = [2, 1], strides = [1, 1]} : vector<2x9xf32> to vector<2x1xf32>
    %41 = vector.broadcast %40 : vector<2x1xf32> to vector<2x256xf32>
    %42 = arith.mulf %32, %41 : vector<2x256xf32>
    %43 = arith.addf %39, %42 : vector<2x256xf32>
    %c16_i32 = arith.constant 16 : i32
    %44 = tpu.dynamic_rotate %43 by %c16_i32 dim 1 : vector<2x256xf32>, i32 -> vector<2x256xf32>
    %45 = vector.broadcast %2 : vector<1x256xf32> to vector<2x256xf32>
    %46 = arith.mulf %44, %45 : vector<2x256xf32>
    %47 = vector.extract_strided_slice %26 {offsets = [0, 3], sizes = [2, 1], strides = [1, 1]} : vector<2x9xf32> to vector<2x1xf32>
    %48 = vector.broadcast %47 : vector<2x1xf32> to vector<2x256xf32>
    %49 = arith.mulf %29, %48 : vector<2x256xf32>
    %50 = vector.extract_strided_slice %26 {offsets = [0, 4], sizes = [2, 1], strides = [1, 1]} : vector<2x9xf32> to vector<2x1xf32>
    %51 = vector.broadcast %50 : vector<2x1xf32> to vector<2x256xf32>
    %52 = arith.mulf %25, %51 : vector<2x256xf32>
    %53 = arith.addf %49, %52 : vector<2x256xf32>
    %54 = vector.extract_strided_slice %26 {offsets = [0, 5], sizes = [2, 1], strides = [1, 1]} : vector<2x9xf32> to vector<2x1xf32>
    %55 = vector.broadcast %54 : vector<2x1xf32> to vector<2x256xf32>
    %56 = arith.mulf %32, %55 : vector<2x256xf32>
    %57 = arith.addf %53, %56 : vector<2x256xf32>
    %58 = arith.addf %46, %57 : vector<2x256xf32>
    %59 = vector.extract_strided_slice %26 {offsets = [0, 6], sizes = [2, 1], strides = [1, 1]} : vector<2x9xf32> to vector<2x1xf32>
    %60 = vector.broadcast %59 : vector<2x1xf32> to vector<2x256xf32>
    %61 = arith.mulf %29, %60 : vector<2x256xf32>
    %62 = vector.extract_strided_slice %26 {offsets = [0, 7], sizes = [2, 1], strides = [1, 1]} : vector<2x9xf32> to vector<2x1xf32>
    %63 = vector.broadcast %62 : vector<2x1xf32> to vector<2x256xf32>
    %64 = arith.mulf %25, %63 : vector<2x256xf32>
    %65 = arith.addf %61, %64 : vector<2x256xf32>
    %66 = vector.extract_strided_slice %26 {offsets = [0, 8], sizes = [2, 1], strides = [1, 1]} : vector<2x9xf32> to vector<2x1xf32>
    %67 = vector.broadcast %66 : vector<2x1xf32> to vector<2x256xf32>
    %68 = arith.mulf %32, %67 : vector<2x256xf32>
    %69 = arith.addf %65, %68 : vector<2x256xf32>
    %c240_i32 = arith.constant 240 : i32
    %70 = tpu.dynamic_rotate %69 by %c240_i32 dim 1 : vector<2x256xf32>, i32 -> vector<2x256xf32>
    %71 = vector.broadcast %3 : vector<1x256xf32> to vector<2x256xf32>
    %72 = arith.mulf %70, %71 : vector<2x256xf32>
    %73 = arith.addf %58, %72 : vector<2x256xf32>
    %c0_17 = arith.constant 0 : index
    %c0_18 = arith.constant 0 : index
    %74 = vector.load %arg5[%c0_17, %c0_18] : memref<2x1xf32, #tpu.memory_space<vmem>>, vector<2x1xf32>
    %75 = vector.broadcast %74 : vector<2x1xf32> to vector<2x256xf32>
    %76 = arith.addf %73, %75 : vector<2x256xf32>
    %77 = arith.truncf %76 : vector<2x256xf32> to vector<2x256xbf16>
    %c0_19 = arith.constant 0 : index
    %c0_20 = arith.constant 0 : index
    %78 = vector.load %arg11[%c0_19, %c0_20] : memref<2x256xbf16, #tpu.memory_space<vmem>>, vector<2x256xbf16>
    tpu.vector_store %arg11[%c0_19, %c0_20], %77 {strides = array<i32>} : memref<2x256xbf16, #tpu.memory_space<vmem>>, vector<2x256xbf16>,
    %c0_21 = arith.constant 0 : index
    %c0_22 = arith.constant 0 : index
    %79 = vector.load %arg11[%c0_21, %c0_22] : memref<2x256xbf16, #tpu.memory_space<vmem>>, vector<2x256xbf16>
    %c0_23 = arith.constant 0 : index
    %c0_24 = arith.constant 0 : index
    %80 = vector.load %arg6[%c0_23, %c0_24] : memref<2x2xbf16, #tpu.memory_space<vmem>>, vector<2x2xbf16>
    %81 = arith.extf %80 : vector<2x2xbf16> to vector<2x2xf32>
    %82 = arith.extf %79 : vector<2x256xbf16> to vector<2x256xf32>
    %83 = vector.extract_strided_slice %81 {offsets = [0, 0], sizes = [2, 1], strides = [1, 1]} : vector<2x2xf32> to vector<2x1xf32>
    %84 = vector.extract_strided_slice %82 {offsets = [0, 0], sizes = [1, 256], strides = [1, 1]} : vector<2x256xf32> to vector<1x256xf32>
    %85 = vector.broadcast %83 : vector<2x1xf32> to vector<2x256xf32>
    %86 = vector.broadcast %84 : vector<1x256xf32> to vector<2x256xf32>
    %87 = arith.mulf %85, %86 : vector<2x256xf32>
    %88 = vector.extract_strided_slice %81 {offsets = [0, 1], sizes = [2, 1], strides = [1, 1]} : vector<2x2xf32> to vector<2x1xf32>
    %89 = vector.extract_strided_slice %82 {offsets = [1, 0], sizes = [1, 256], strides = [1, 1]} : vector<2x256xf32> to vector<1x256xf32>
    %90 = vector.broadcast %88 : vector<2x1xf32> to vector<2x256xf32>
    %91 = vector.broadcast %89 : vector<1x256xf32> to vector<2x256xf32>
    %92 = arith.mulf %90, %91 : vector<2x256xf32>
    %93 = arith.addf %87, %92 : vector<2x256xf32>
    %c0_25 = arith.constant 0 : index
    %c0_26 = arith.constant 0 : index
    %94 = vector.load %arg7[%c0_25, %c0_26] : memref<2x1xf32, #tpu.memory_space<vmem>>, vector<2x1xf32>
    %95 = vector.broadcast %94 : vector<2x1xf32> to vector<2x256xf32>
    %96 = arith.addf %93, %95 : vector<2x256xf32>
    %cst_27 = arith.constant 0.000000e+00 : f32
    %97 = vector.broadcast %cst_27 : f32 to vector<2x256xf32>
    %98 = arith.maximumf %96, %97 : vector<2x256xf32>
    %c0_28 = arith.constant 0 : index
    %c0_29 = arith.constant 0 : index
    %c0_30 = arith.constant 0 : index
    %99 = vector.load %arg1[%c0_28, %c0_29, %c0_30] : memref<1x4x256xf32, #tpu.memory_space<vmem>>, vector<1x2x256xf32>
    %100 = vector.shape_cast %99 : vector<1x2x256xf32> to vector<2x256xf32>
    %c0_31 = arith.constant 0 : index
    %c0_32 = arith.constant 0 : index
    %c0_33 = arith.constant 0 : index
    %c0_34 = arith.constant 0 : index
    %101 = vector.load %arg9[%c0_31, %c0_32, %c0_33, %c0_34] : memref<1x2x2x256xf32, #tpu.memory_space<vmem>>, vector<1x2x1x256xf32>
    %102 = vector.shape_cast %101 : vector<1x2x1x256xf32> to vector<2x256xf32>
    %103 = vector.shape_cast %100 : vector<2x256xf32> to vector<1x2x1x256xf32>
    tpu.vector_store %arg9[%c0_31, %c0_32, %c0_33, %c0_34], %103 {strides = array<i32>} : memref<1x2x2x256xf32, #tpu.memory_space<vmem>>, vector<1x2x1x256xf32>,
    %c0_35 = arith.constant 0 : index
    %c0_36 = arith.constant 0 : index
    %c1_37 = arith.constant 1 : index
    %c0_38 = arith.constant 0 : index
    %104 = vector.load %arg9[%c0_35, %c0_36, %c1_37, %c0_38] : memref<1x2x2x256xf32, #tpu.memory_space<vmem>>, vector<1x2x1x256xf32>
    %105 = vector.shape_cast %104 : vector<1x2x1x256xf32> to vector<2x256xf32>
    %106 = vector.shape_cast %98 : vector<2x256xf32> to vector<1x2x1x256xf32>
    tpu.vector_store %arg9[%c0_35, %c0_36, %c1_37, %c0_38], %106 {strides = array<i32>} : memref<1x2x2x256xf32, #tpu.memory_space<vmem>>, vector<1x2x1x256xf32>,
    return
  }
  func.func @transform_0(%arg0: i32) -> (i32, i32, i32) {
    %c0_i32 = arith.constant 0 : i32
    %c0_i32_0 = arith.constant 0 : i32
    %c0_i32_1 = arith.constant 0 : i32
    return %arg0, %c0_i32, %c0_i32_0 : i32, i32, i32
  }
  func.func @transform_1(%arg0: i32) -> (i32, i32) {
    %c0_i32 = arith.constant 0 : i32
    %c0_i32_0 = arith.constant 0 : i32
    %c0_i32_1 = arith.constant 0 : i32
    return %c0_i32, %c0_i32_0 : i32, i32
  }
  func.func @transform_2(%arg0: i32) -> (i32, i32) {
    %c0_i32 = arith.constant 0 : i32
    %c0_i32_0 = arith.constant 0 : i32
    %c0_i32_1 = arith.constant 0 : i32
    return %c0_i32, %c0_i32_0 : i32, i32
  }
  func.func @transform_3(%arg0: i32) -> (i32, i32) {
    %c0_i32 = arith.constant 0 : i32
    %c0_i32_0 = arith.constant 0 : i32
    %c0_i32_1 = arith.constant 0 : i32
    return %c0_i32, %c0_i32_0 : i32, i32
  }
  func.func @transform_4(%arg0: i32) -> (i32, i32) {
    %c0_i32 = arith.constant 0 : i32
    %c0_i32_0 = arith.constant 0 : i32
    %c0_i32_1 = arith.constant 0 : i32
    return %c0_i32, %c0_i32_0 : i32, i32
  }
  func.func @transform_5(%arg0: i32) -> (i32, i32) {
    %c0_i32 = arith.constant 0 : i32
    %c0_i32_0 = arith.constant 0 : i32
    %c0_i32_1 = arith.constant 0 : i32
    return %c0_i32, %c0_i32_0 : i32, i32
  }
  func.func @transform_6(%arg0: i32) -> (i32, i32) {
    %c0_i32 = arith.constant 0 : i32
    %c0_i32_0 = arith.constant 0 : i32
    %c0_i32_1 = arith.constant 0 : i32
    return %c0_i32, %c0_i32_0 : i32, i32
  }
  func.func @transform_7(%arg0: i32) -> (i32, i32) {
    %c0_i32 = arith.constant 0 : i32
    %c0_i32_0 = arith.constant 0 : i32
    %c0_i32_1 = arith.constant 0 : i32
    return %c0_i32, %c0_i32_0 : i32, i32
  }
  func.func @transform_8(%arg0: i32) -> (i32, i32, i32, i32) {
    %c0_i32 = arith.constant 0 : i32
    %c0_i32_0 = arith.constant 0 : i32
    %c0_i32_1 = arith.constant 0 : i32
    %c0_i32_2 = arith.constant 0 : i32
    return %arg0, %c0_i32, %c0_i32_0, %c0_i32_1 : i32, i32, i32, i32
  }
}

</mosaic_0001>

<bundles_post_ra>
// kernel: inverted_residual_forward.1
= control target key start
LH: loop header
LB: loop body
LE: loop exit
PB: predicated region body
PF: predicated region fallthrough
CT: control target
= control target key end

     0   :  { %s1000_s27 = smov 0   ;;  %s1176_s0 = inlined_call_operand.vmem [shape: f32[2,4,256], index: 0, kind: input, shape index: {}]   ;;  %s1177_s1 = inlined_call_operand.vmem [shape: bf16[2,2], index: 1, kind: input, shape index: {}]   ;;  %s1178_s2 = inlined_call_operand.vmem [shape: f32[2,1], index: 2, kind: input, shape index: {}]   ;;  %s1179_s3 = inlined_call_operand.vmem [shape: f32[2,9], index: 3, kind: input, shape index: {}]   ;;  %s1180_s4 = inlined_call_operand.vmem [shape: f32[2,1], index: 4, kind: input, shape index: {}]   ;;  %s1181_s5 = inlined_call_operand.vmem [shape: bf16[2,2], index: 5, kind: input, shape index: {}]   ;;  %s1182_s6 = inlined_call_operand.vmem [shape: f32[2,1], index: 6, kind: input, shape index: {}]   ;;  %s1183_s7 = inlined_call_operand.vmem [shape: f32[4,256], index: 7, kind: input, shape index: {}]   ;;  %s1184_s8 = inlined_call_operand.vmem [shape: f32[2,2,2,256], index: 8, kind: output, shape index: {}]  }
   0x1 LB: > { %s870_s28 = sadd.s32 4294967295, %s937_s27   ;;  %p874_p0 = scmp.ge.s32.totalorder %s937_s27, 1  ;;  %s937_s27 = sphi %s1000_s27, %s18_s27  }
   0x2   : > { %p262_p1 = scmp.lt.s32.totalorder %s937_s27, 3 }
   0x4   : > { %p263_p2 = pnand %p874_p0, %p262_p1 }
   0x5   : > { %p296_p3 = scmp.lt.s32.totalorder (!%p263_p2), %s870_s28, 1  ;;  %s948_s17 = smov (!%p263_p2), 1  }
   0x6   : > { %266 = sbr.rel (%p263_p2) target bundleno = 468 (0x1d4), region = 52  ;;  %s949_s18 = smov (!%p263_p2), 127  }
   0x7   : > { %s952_s23 = smov (!%p263_p2), 16   ;;  %s953_s26 = smov (!%p263_p2), 112  }
   0xb   : > { %v314_v0 = vld [vmem:[%s1177_s1] sm:$0x1]  ;;  %v939_v2 = vmov 0   ;;  %v940_v5 = vmov 1   ;;  %v941_v6 = vmov 7   ;;  %v942_v7 = vmov 6  }
   0xc   : > { %v401_v1 = vld [vmem:[%s1178_s2] sm:$0x3]  ;;  %916 = vset.pattern.permute.xlu0 %v939_v2  ;;  %v315_v3 = vunpack.c.l.bf16 %v314_v0  ;;  %918 = vset.pattern.permute.xlu1 %v939_v2  ;;  %v943_v8 = vmov 2   ;;  %v944_v9 = vmov 4   ;;  %v945_v10 = vmov 8   ;;  %s1188_s28 = smov (!%p296_p3, %s870_s28), 1 }
   0xd   : > { %404 = vperm.xlu1 %918, %v401_v1   ;;  %v1019_v4 = vld [vmem:[%s1179_s3] sm:$0x3]  ;;  %v324_v11 = vlaneseq  ;;  %s890_s13 = sshll.u32 %s1188_s28, 3  ;;  %v946_v18 = vmov 269488144   ;;  %v950_v52 = vmov 3  }
   0xe   : > { %318 = vperm.xlu0 %916, %v315_v3   ;;  %s1044_s16 = scalar_lea.vmem %s1176_s0, %s890_s13  ;;  %v322_v19 = vunpack.c.l.s4 %v946_v18  ;;  %v947_v20 = vmov 1983009808   ;;  %v951_v53 = vmov 5   ;;  %v879_v63 = vld [vmem:[%s1183_s7 + $0x1] ss:$4 sm:$0x3]  ;;  %s1129_s14 = scalar_lea.vmem %s1184_s8, %s890_s13 }
   0xf   : > { %v1037_v12 = vshrl.u32 %v324_v11, 7  ;;  %v313_v17 = vld [vmem:[%s1044_s16] sm:$0xcc]  ;;  %v351_v21 = vunpack.c.l.s4 %v947_v20  ;;  %v1084_v61 = vand.u32 127, %v324_v11  ;;  %vm1132_vm2 = vcmp.lt.s32.totalorder %v324_v11, 256 }
  0x10   : > { %v323_v26 = vunpack.c.0.s8 %v322_v19  ;;  %v306_v1 = vld [vmem:[%s1183_s7] ss:$4 sm:$0x3]  ;;  %v881_v11 = vld [vmem:[%s1183_s7 + $0x3] ss:$4 sm:$0x3] }
  0x11   : > { %919 = vset.pattern.permute.xlu1 %v940_v5  ;;  %v1047_v13 = vsub.s32 2, %v1037_v12  ;;  %v335_v14 = vsub.s32 6, %v1037_v12  ;;  %v1051_v15 = vsub.s32 3, %v1037_v12  ;;  %v376_v16 = vsub.s32 7, %v1037_v12 }
  0x12   : > { %917 = vset.pattern.permute.xlu0 %v940_v5  ;;  %480 = vperm.xlu1 %919, %v1019_v4   ;;  %v352_v27 = vunpack.c.0.s8 %v351_v21  ;;  %v1062_v32 = vsub.s32 %v323_v26, %v1037_v12  ;;  %v1087_v62 = vsub.s32 0, %v1037_v12  ;;  %v1093_v0 = vsub.s32 1, %v1037_v12 }
  0x13   : > { %360 = vperm.xlu0 %917, %v315_v3   ;;  %v332_v22 = vrot.slane %v313_v17, %v1047_v13  ;;  %v336_v23 = vrot.slane %v313_v17, %v335_v14  ;;  %v373_v24 = vrot.slane %v313_v17, %v1051_v15  ;;  %v377_v25 = vrot.slane %v313_v17, %v376_v16 }
  0x14   : > { %v1065_v33 = vsub.s32 %v352_v27, %v1037_v12  ;;  %vm456_vm0 = vcmp.lt.s32.totalorder %v1084_v61, 127  ;;  %vm436_vm1 = vcmp.lt.s32.totalorder %v1084_v61, 1  ;;  %vm516_vm3 = vcmp.lt.s32.totalorder %v1084_v61, 16 }
  0x15   : > { %v342_v28 = vrot.slane %v332_v22, %v1047_v13  ;;  %v346_v29 = vrot.slane %v336_v23, %v1047_v13  ;;  %v383_v30 = vrot.slane %v373_v24, %v1051_v15  ;;  %v387_v31 = vrot.slane %v377_v25, %v1051_v15 }
  0x16   : > { %920 = vset.pattern.permute.xlu1 %v941_v6  ;;  %vm616_vm4 = vcmp.lt.s32.totalorder %v1084_v61, 112 }
  0x17   : > { %580 = vperm.xlu1 %920, %v1019_v4   ;;  %921 = vset.pattern.permute.xlu0 %v939_v2  ;;  %v349_v35 = vcombine.low %v342_v28, %v346_v29  ;;  %v390_v36 = vcombine.low %v383_v30, %v387_v31 }
  0x18   : > { %474 = vperm.xlu0 %921, %v1019_v4  }
  0x19   : > { %v356_v38 = vrot.slane %v349_v35, %v1065_v33  ;;  %v397_v39 = vrot.slane %v390_v36, %v1065_v33 }
  0x1b   : > { %923 = vset.pattern.permute.xlu1 %v942_v7  ;;  %v467_v7 = vrot.slane %v879_v63, %v1093_v0 }
  0x1c   : > { %574 = vperm.xlu1 %923, %v1019_v4   ;;  %922 = vset.pattern.permute.xlu0 %v943_v8  ;;  %v443_v8 = vrot.slane %v306_v1, %v1087_v62 }
  0x1d   : > { %505 = vperm.xlu0 %922, %v1019_v4  }
  0x20   : > { %924 = vset.pattern.permute.xlu1 %v945_v10 }
  0x21   : > { %925 = vset.pattern.permute.xlu0 %v944_v9  ;;  %v447_v9 = vrot.slane %v306_v1, %v1093_v0 }
  0x88   : > { %v405_v41 = vpop.permute.xlu1 %404 }
  0x89   : > { %v319_v34 = vpop.permute.xlu0 %318  ;;  %v412_v45 = vrot.slane %v405_v41, %v1062_v32 }
  0x8a   : > { %v327_v37 = vrot.slane %v319_v34, %v1062_v32 }
  0x8c   : > { %v358_v43 = vmul.f32 %v356_v38, %v327_v37 }
  0x8d   : > { %v481_v54 = vpop.permute.xlu1 %480 }
  0x8e   : > { %v361_v40 = vpop.permute.xlu0 %360  ;;  %v488_v58 = vrot.slane %v481_v54, %v1062_v32 }
  0x8f   : > { %v369_v42 = vrot.slane %v361_v40, %v1062_v32 }
  0x91   : > { %v399_v44 = vmul.f32 %v397_v39, %v369_v42 }
  0x92   : > { %v581_v55 = vpop.permute.xlu1 %580 }
  0x93   : > { %v400_v46 = vadd.f32 %v399_v44, %v358_v43  ;;  %v475_v56 = vpop.permute.xlu0 %474  ;;  %v588_v17 = vrot.slane %v581_v55, %v1062_v32 }
  0x95   : > { %v414_v47 = vadd.f32 %v412_v45, %v400_v46 }
  0x97   : > { %v415_v48 = vmax.f32 %v414_v47, 0.0  ;;  %v575_v57 = vpop.permute.xlu1 %574 }
  0x98   : > { %v506_v59 = vpop.permute.xlu0 %505 }
  0x99   : > { %416 = vst [vmem:[#allocation2] sm:$0xf] %v415_v48 }
  0xa0   : > { %v1072_v49 = vld [vmem:[#allocation2] sm:$0xf] }
  0xa1   : > { %v426_v50 = vrot.slane %v1072_v49, %v1065_v33  ;;  %v590_v26 = vmul.f32 %v588_v17, %v1072_v49 }
  0xa3   : > { %430 = vrot.lane.b32.xlu1 %v426_v50, %s948_s17  ;;  %v427_v51 = vcombine.high %v426_v50, %v426_v50  ;;  %v598_v36 = vrot.slane %v590_v26, %v1065_v33 }
  0xa5   : > { %454 = vrot.lane.b32.xlu0 %v427_v51, %s949_s18  ;;  %v599_v42 = vcombine.high %v598_v36, %v598_v36 }
  0xa7   : > { %452 = vrot.lane.b32.xlu1 %v426_v50, %s949_s18  ;;  %v664_v50 = vld [vmem:[%s1181_s5] sm:$0x1] }
  0xa8   : > { %v665_v55 = vunpack.c.l.bf16 %v664_v50 }
  0xa9   : > { %539 = vperm.xlu0 %925, %v1019_v4  }
  0xab   : > { %432 = vrot.lane.b32.xlu1 %v427_v51, %s948_s17 }
  0xad   : > { %928 = vset.pattern.permute.xlu0 %v939_v2 }
  0xaf   : > { %605 = vperm.xlu1 %924, %v1019_v4  }
  0xb3   : > { %926 = vset.pattern.permute.xlu1 %v950_v52 }
  0xb4   : > { %533 = vperm.xlu1 %926, %v1019_v4  }
  0xb8   : > { %927 = vset.pattern.permute.xlu1 %v951_v53 }
  0xb9   : > { %564 = vperm.xlu1 %927, %v1019_v4   ;;  %v463_v4 = vrot.slane %v879_v63, %v1087_v62 }
  0xbd   : > { %929 = vset.pattern.permute.xlu1 %v939_v2  ;;  %v490_v2 = vmul.f32 %v488_v58, %v1072_v49 }
  0xbf   : > { %v498_v16 = vrot.slane %v490_v2, %v1065_v33 }
  0xc1   : > { %v499_v25 = vcombine.high %v498_v16, %v498_v16 }
 0x115   : > { %v431_v60 = vpop.permute.xlu1 %430 }
 0x117   : > { %v455_v6 = vpop.permute.xlu0 %454 }
 0x119   : > { %v453_v3 = vpop.permute.xlu1 %452 }
 0x11a   : > { %v457_v10 = vsel %vm456_vm0, %v453_v3, %v455_v6  ;;  %v458_v14 = vsel %vm456_vm0, %v455_v6, %v453_v3 }
 0x11b   : > { %v470_v21 = vmul.f32 %v463_v4, %v457_v10  ;;  %v471_v22 = vmul.f32 %v467_v7, %v458_v14  ;;  %v954_v7 = vmov 1966171168  }
 0x11d   : > { %v433_v18 = vpop.permute.xlu1 %432  ;;  %v508_v30 = vmul.f32 %v506_v59, %v470_v21  ;;  %v509_v34 = vmul.f32 %v506_v59, %v471_v22 }
 0x11e   : > { %v437_v19 = vsel %vm436_vm1, %v431_v60, %v433_v18  ;;  %v438_v20 = vsel %vm436_vm1, %v433_v18, %v431_v60  ;;  %v752_v60 = vld [vmem:[%s1182_s6] sm:$0x3] }
 0x11f   : > { %v450_v23 = vmul.f32 %v443_v8, %v438_v20  ;;  %v451_v24 = vmul.f32 %v447_v9, %v437_v19  ;;  %v648_v8 = vunpack.c.l.s4 %v954_v7  ;;  %v884_v9 = vld.sshfl [vmem:[%s1044_s16] sm:$0x55 pattern:$0x75316420] }
 0x120   : > { %v776_v14 = vcombine.high %v884_v9, %v884_v9  ;;  %v880_v20 = vld [vmem:[%s1183_s7 + $0x2] ss:$4 sm:$0x3] }
 0x121   : > { %v477_v27 = vmul.f32 %v475_v56, %v450_v23  ;;  %v478_v28 = vmul.f32 %v475_v56, %v451_v24  ;;  %v577_v39 = vmul.f32 %v575_v57, %v450_v23  ;;  %v578_v40 = vmul.f32 %v575_v57, %v451_v24 }
 0x122   : > { %v649_v10 = vunpack.c.0.s8 %v648_v8 }
 0x123   : > { %v502_v29 = vadd.f32 %v498_v16, %v477_v27  ;;  %v503_v31 = vadd.f32 %v499_v25, %v478_v28  ;;  %v602_v43 = vadd.f32 %v598_v36, %v577_v39  ;;  %v603_v46 = vadd.f32 %v599_v42, %v578_v40 }
 0x124   : > { %v540_v35 = vpop.permute.xlu0 %539  ;;  %v652_v16 = vsub.s32 %v649_v10, %v1037_v12  ;;  %v623_v27 = vrot.slane %v881_v11, %v1087_v62  ;;  %v627_v28 = vrot.slane %v881_v11, %v1093_v0 }
 0x125   : > { %v510_v37 = vadd.f32 %v508_v30, %v502_v29  ;;  %v511_v38 = vadd.f32 %v509_v34, %v503_v31  ;;  %v547_v41 = vrot.slane %v540_v35, %v1062_v32 }
 0x126   : > { %v783_v17 = vrot.slane %v884_v9, %v652_v16  ;;  %v790_v18 = vrot.slane %v776_v14, %v652_v16 }
 0x127   : > { %512 = vrot.lane.b32.xlu0 %v510_v37, %s952_s23  ;;  %514 = vrot.lane.b32.xlu1 %v511_v38, %s952_s23  ;;  %v549_v45 = vmul.f32 %v547_v41, %v1072_v49  ;;  %v634_v49 = vld [vmem:[%s1180_s4] sm:$0x3] }
 0x128   : > { %797 = vst.msk [vmem:[%s1129_s14] ss:$2 sm:$0x3] %vm1132_vm2, %v783_v17  ;;  %885 = vst.msk [vmem:[%s1129_s14 + $0x4] ss:$2 sm:$0x3] %vm1132_vm2, %v790_v18 }
 0x129   : > { %v557_v53 = vrot.slane %v549_v45, %v1065_v33 }
 0x12a   : > { %v606_v44 = vpop.permute.xlu1 %605 }
 0x12b   : > { %v608_v47 = vmul.f32 %v606_v44, %v470_v21  ;;  %v609_v48 = vmul.f32 %v606_v44, %v471_v22  ;;  %v558_v58 = vcombine.high %v557_v53, %v557_v53 }
 0x12d   : > { %v610_v51 = vadd.f32 %v608_v47, %v602_v43  ;;  %v611_v52 = vadd.f32 %v609_v48, %v603_v46 }
 0x12f   : > { %614 = vrot.lane.b32.xlu1 %v611_v52, %s953_s26  ;;  %612 = vrot.lane.b32.xlu0 %v610_v51, %s953_s26  ;;  %v534_v54 = vpop.permute.xlu1 %533 }
 0x130   : > { %v536_v56 = vmul.f32 %v534_v54, %v450_v23  ;;  %v537_v57 = vmul.f32 %v534_v54, %v451_v24 }
 0x132   : > { %v561_v63 = vadd.f32 %v557_v53, %v536_v56  ;;  %v562_v1 = vadd.f32 %v558_v58, %v537_v57 }
 0x133   : > { %637 = vperm.xlu0 %928, %v634_v49   ;;  %669 = vperm.xlu1 %929, %v665_v55  }
 0x134   : > { %v565_v59 = vpop.permute.xlu1 %564 }
 0x135   : > { %v567_v2 = vmul.f32 %v565_v59, %v470_v21  ;;  %v568_v3 = vmul.f32 %v565_v59, %v471_v22  ;;  %v523_v21 = vrot.slane %v880_v20, %v1087_v62  ;;  %v527_v22 = vrot.slane %v880_v20, %v1093_v0 }
 0x137   : > { %v569_v4 = vadd.f32 %v567_v2, %v561_v63  ;;  %v570_v6 = vadd.f32 %v568_v3, %v562_v1  ;;  %755 = vperm.xlu0 %928, %v752_v60   ;;  %930 = vset.pattern.permute.xlu1 %v940_v5 }
 0x138   : > { %711 = vperm.xlu1 %930, %v665_v55  }
 0x199   : > { %v513_v12 = vpop.permute.xlu0 %512  ;;  %v515_v19 = vpop.permute.xlu1 %514 }
 0x19a   : > { %v517_v25 = vsel %vm516_vm3, %v513_v12, %v515_v19  ;;  %v518_v26 = vsel %vm516_vm3, %v515_v19, %v513_v12 }
 0x19b   : > { %v530_v31 = vmul.f32 %v523_v21, %v518_v26  ;;  %v531_v34 = vmul.f32 %v527_v22, %v517_v25 }
 0x19d   : > { %v571_v37 = vadd.f32 %v569_v4, %v530_v31  ;;  %v572_v38 = vadd.f32 %v570_v6, %v531_v34 }
 0x1a1   : > { %v613_v23 = vpop.permute.xlu0 %612  ;;  %v615_v24 = vpop.permute.xlu1 %614 }
 0x1a2   : > { %v617_v29 = vsel %vm616_vm4, %v613_v23, %v615_v24  ;;  %v618_v30 = vsel %vm616_vm4, %v615_v24, %v613_v23 }
 0x1a3   : > { %v630_v35 = vmul.f32 %v623_v27, %v617_v29  ;;  %v631_v36 = vmul.f32 %v627_v28, %v618_v30 }
 0x1a5   : > { %v632_v39 = vadd.f32 %v630_v35, %v571_v37  ;;  %v633_v40 = vadd.f32 %v631_v36, %v572_v38 }
 0x1ae   : > { %v638_v41 = vpop.permute.xlu0 %637  ;;  %v670_v45 = vpop.permute.xlu1 %669 }
 0x1af   : > { %v640_v42 = vadd.f32 %v638_v41, %v632_v39  ;;  %v641_v61 = vadd.f32 %v638_v41, %v633_v40  ;;  %v678_v60 = vrot.slane %v670_v45, %v1062_v32 }
 0x1b1   : > { %v882_v43 = vpack.c.bf16 %v641_v61, %v640_v42 }
 0x1b2   : > { %v756_v63 = vpop.permute.xlu0 %755 }
 0x1b3   : > { %v653_v44 = vrot.slane %v882_v43, %v652_v16  ;;  %v712_v53 = vpop.permute.xlu1 %711 }
 0x1b4   : > { %v720_v59 = vrot.slane %v712_v53, %v1062_v32 }
 0x1b5   : > { %883 = vst.sshfl [vmem:[#allocation3] sm:$0x5 pattern:$0x73625140] %v653_v44 }
 0x1bc   : > { %v663_v46 = vld [vmem:[#allocation3] sm:$0x3] }
 0x1bd   : > { %v666_v47 = vunpack.c.l.bf16 %v663_v46 }
 0x1bf   : > { %v683_v48 = vrot.slane %v666_v47, %v1087_v62  ;;  %v687_v50 = vrot.slane %v666_v47, %v1047_v13  ;;  %v724_v51 = vrot.slane %v666_v47, %v1093_v0  ;;  %v728_v52 = vrot.slane %v666_v47, %v1051_v15 }
 0x1c1   : > { %v693_v54 = vrot.slane %v683_v48, %v1087_v62  ;;  %v697_v55 = vrot.slane %v687_v50, %v1087_v62  ;;  %v734_v49 = vrot.slane %v724_v51, %v1093_v0  ;;  %v738_v56 = vrot.slane %v728_v52, %v1093_v0 }
 0x1c2   : > { %v763_v62 = vrot.slane %v756_v63, %v1062_v32 }
 0x1c3   : > { %v700_v57 = vcombine.low %v693_v54, %v697_v55  ;;  %v741_v58 = vcombine.low %v734_v49, %v738_v56 }
 0x1c5   : > { %v707_v13 = vrot.slane %v700_v57, %v1065_v33  ;;  %v748_v15 = vrot.slane %v741_v58, %v1065_v33 }
 0x1c7   : > { %v709_v1 = vmul.f32 %v707_v13, %v678_v60  ;;  %v750_v2 = vmul.f32 %v748_v15, %v720_v59 }
 0x1c9   : > { %v751_v3 = vadd.f32 %v750_v2, %v709_v1 }
 0x1cb   : > { %v765_v4 = vadd.f32 %v763_v62, %v751_v3 }
 0x1cd   : > { %v766_v0 = vmax.f32 %v765_v4, 0.0 }
 0x1cf   : > { %v807_v6 = vrot.slane %v766_v0, %v652_v16 }
 0x1d1   : > { %v808_v7 = vcombine.high %v807_v6, %v807_v6  ;;  %886 = vst.msk [vmem:[%s1129_s14 + $0x1] ss:$2 sm:$0x3] %vm1132_vm2, %v807_v6 }
 0x1d3   : > { %887 = vst.msk [vmem:[%s1129_s14 + $0x5] ss:$2 sm:$0x3] %vm1132_vm2, %v808_v7 }
 0x1d4 PF: > { %s18_s27 = sadd.s32 1, %s937_s27  }
 0x1d5   : > { %p15_p4 = scmp.ge.s32.totalorder %s18_s27, 4  }
 0x1d7   :  { %17 = sbr.rel (!%p15_p4) target bundleno = 1 (0x1), region = 88 }

</bundles_post_ra>
